<compile_context>
chip_gen: v6e
topology: v6e:2x2x1
jax: 0.10.0
libtpu: 0.0.40
codegen_flags: <defaults>
</compile_context>

<pallas_src>
import jax
import jax.numpy as jnp
from jax.experimental import pallas as pl
from jax.experimental.pallas import tpu as pltpu


def _linear_kernel(x_ref, w_ref, b_ref, o_ref):
    # x_ref: (TM, D)  w_ref: (D, TN)  b_ref: (1, TN)  o_ref: (TM, TN)
    acc = jnp.dot(x_ref[...], w_ref[...], preferred_element_type=jnp.float32)
    o_ref[...] = (acc + b_ref[...]).astype(o_ref.dtype)


def _choose_tiles(B: int, D: int, O: int):
    """Pick (TM, TN) so double-buffered tiles fit comfortably in scoped VMEM
    on all generations (v7x has only 64 MiB physical / 32 MiB scoped)."""
    # Out-feature tile: full O when small (exempt from the 128 rule), else a
    # 128-multiple with a ragged tail handled by cdiv.
    TN = O if O <= 256 else 256

    budget = 20 * 1024 * 1024                  # leave headroom under 32 MiB
    w_bytes = 2 * D * TN * 4                   # double-buffered weight tile
    avail = max(budget - w_bytes, 2 * 1024 * 1024)
    per_row = 2 * 4 * (D + TN)                 # double-buffered X row + out row
    TM = max(8, min(1024, avail // per_row))
    TM = (TM // 8) * 8                         # sublane-aligned

    if B <= TM:
        if B >= 1024:
            # Keep >= 2 batch blocks so v7x megacore can shard the batch axis.
            TM = ((-(-B // 2)) + 7) // 8 * 8
        else:
            TM = B                             # block dim == full dim: exempt
    return TM, TN


def linear_regression_forward(x, w, b):
    """Pallas forward pass matching torch.matmul(X, w) + b.

    x: (B, D) float32
    w: (D,) if out_dims == 1 (torch .squeeze()), else (D, O)
    b: (O,)
    returns: (B,) if out_dims == 1 else (B, O)
    """
    x = jnp.asarray(x, jnp.float32)
    w = jnp.asarray(w, jnp.float32)
    b = jnp.asarray(b, jnp.float32)

    B, D = x.shape
    squeezed = (w.ndim == 1)
    w2 = w.reshape(D, 1) if squeezed else w
    O = w2.shape[1]
    b2 = b.reshape(1, O)

    TM, TN = _choose_tiles(B, D, O)
    grid = (pl.cdiv(B, TM), pl.cdiv(O, TN))

    cost = pl.CostEstimate(flops=2 * B * D * O, transcendentals=0,
                           bytes_accessed=4 * (B * D + D * O + B * O + O))

    out = pl.pallas_call(
        _linear_kernel,
        out_shape=jax.ShapeDtypeStruct((B, O), jnp.float32),
        grid_spec=pltpu.PrefetchScalarGridSpec(
            num_scalar_prefetch=0,
            grid=grid,
            in_specs=[
                pl.BlockSpec((TM, D), lambda i, j: (i, 0)),   # X: stream batch
                pl.BlockSpec((D, TN), lambda i, j: (0, j)),   # W: resident per j
                pl.BlockSpec((1, TN), lambda i, j: (0, j)),   # bias
            ],
            out_specs=pl.BlockSpec((TM, TN), lambda i, j: (i, j)),
        ),
        compiler_params=pltpu.CompilerParams(
            dimension_semantics=("parallel", "parallel"),
            vmem_limit_bytes=32 * 1024 * 1024,
        ),
        cost_estimate=cost,
    )(x, w2, b2)

    if squeezed:
        # torch: (B, D) @ (D,) + (1,) -> (B,)
        return out.reshape(B)
    return out


if __name__ == "__main__":
    key = jax.random.PRNGKey(0)
    kw, kb, kx, kw2, kb2, kw3, kb3, kx3 = jax.random.split(key, 8)

    # Case 1: default out_dims=1 (torch .squeeze() -> 1-D weight).
    in_dims, out_dims, batch = 32, 1, 8
    w = jax.random.normal(kw, (in_dims, out_dims), dtype=jnp.float32).squeeze()
    b = jax.random.normal(kb, (out_dims,), dtype=jnp.float32)
    x = jax.random.normal(kx, (batch, in_dims), dtype=jnp.float32)

    y = jax.block_until_ready(linear_regression_forward(x, w, b))
    y_ref = jnp.matmul(x, w) + b
    assert y.shape == y_ref.shape, (y.shape, y_ref.shape)
    assert jnp.allclose(y, y_ref, atol=2e-4, rtol=2e-4)

    # Case 2: multi-output regression (out_dims=4).
    out_dims2 = 4
    w2 = jax.random.normal(kw2, (in_dims, out_dims2), dtype=jnp.float32)
    b2 = jax.random.normal(kb2, (out_dims2,), dtype=jnp.float32)

    y2 = jax.block_until_ready(linear_regression_forward(x, w2, b2))
    y2_ref = jnp.matmul(x, w2) + b2
    assert y2.shape == y2_ref.shape, (y2.shape, y2_ref.shape)
    assert jnp.allclose(y2, y2_ref, atol=2e-4, rtol=2e-4)

    # Case 3: batch not a multiple of 8 and odd out_dims (exercises the
    # block-dim-equals-full-dim exemption, no padding anywhere).
    batch3, out_dims3 = 10, 3
    x3 = jax.random.normal(kx3, (batch3, in_dims), dtype=jnp.float32)
    w3 = jax.random.normal(kw3, (in_dims, out_dims3), dtype=jnp.float32)
    b3 = jax.random.normal(kb3, (out_dims3,), dtype=jnp.float32)

    y3 = jax.block_until_ready(linear_regression_forward(x3, w3, b3))
    y3_ref = jnp.matmul(x3, w3) + b3
    assert y3.shape == y3_ref.shape, (y3.shape, y3_ref.shape)
    assert jnp.allclose(y3, y3_ref, atol=2e-4, rtol=2e-4)

    print("KERNEL_OK")
</pallas_src>

<mosaic_0001>
module attributes {stable_mosaic.version = 11 : i64} {
  func.func @_linear_kernel(%arg0: i32, %arg1: i32, %arg2: memref<8x32xf32, #tpu.memory_space<vmem>>, %arg3: memref<32x1xf32, #tpu.memory_space<vmem>>, %arg4: memref<1x1xf32, #tpu.memory_space<vmem>>, %arg5: memref<8x1xf32, #tpu.memory_space<vmem>>) attributes {dimension_semantics = [#tpu.dimension_semantics<parallel>, #tpu.dimension_semantics<parallel>], iteration_bounds = array<i64: 1, 1>, scalar_prefetch = 0 : i64, scratch_operands = 0 : i64, tpu.core_type = #tpu.core_type<tc>, window_params = [{transform_indices = @transform_0, window_bounds = array<i64: 8, 32>}, {transform_indices = @transform_1, window_bounds = array<i64: 32, 1>}, {transform_indices = @transform_2, window_bounds = array<i64: 1, 1>}, {transform_indices = @transform_3, window_bounds = array<i64: 8, 1>}]} {
    %c0 = arith.constant 0 : index
    %c0_0 = arith.constant 0 : index
    %0 = vector.load %arg2[%c0, %c0_0] : memref<8x32xf32, #tpu.memory_space<vmem>>, vector<8x32xf32>
    %c0_1 = arith.constant 0 : index
    %c0_2 = arith.constant 0 : index
    %1 = vector.load %arg3[%c0_1, %c0_2] : memref<32x1xf32, #tpu.memory_space<vmem>>, vector<32x1xf32>
    %cst = arith.constant dense<0.000000e+00> : vector<8x1xf32>
    %2 = tpu.matmul %0, %1, %cst {dimension_numbers = #tpu.dot_dimension_numbers<[1], [0], [0], [1], [0, 0, 1, 1], [], []>} : vector<8x32xf32>, vector<32x1xf32>, vector<8x1xf32> -> vector<8x1xf32>
    %c0_3 = arith.constant 0 : index
    %c0_4 = arith.constant 0 : index
    %3 = vector.load %arg4[%c0_3, %c0_4] : memref<1x1xf32, #tpu.memory_space<vmem>>, vector<1x1xf32>
    %4 = vector.broadcast %3 : vector<1x1xf32> to vector<8x1xf32>
    %5 = arith.addf %2, %4 : vector<8x1xf32>
    %c0_5 = arith.constant 0 : index
    %c0_6 = arith.constant 0 : index
    %6 = vector.load %arg5[%c0_5, %c0_6] : memref<8x1xf32, #tpu.memory_space<vmem>>, vector<8x1xf32>
    tpu.vector_store %arg5[%c0_5, %c0_6], %5 {strides = array<i32>} : memref<8x1xf32, #tpu.memory_space<vmem>>, vector<8x1xf32>,
    return
  }
  func.func @transform_0(%arg0: i32, %arg1: i32) -> (i32, i32) {
    %c0_i32 = arith.constant 0 : i32
    %c0_i32_0 = arith.constant 0 : i32
    return %arg0, %c0_i32 : i32, i32
  }
  func.func @transform_1(%arg0: i32, %arg1: i32) -> (i32, i32) {
    %c0_i32 = arith.constant 0 : i32
    %c0_i32_0 = arith.constant 0 : i32
    return %c0_i32, %arg1 : i32, i32
  }
  func.func @transform_2(%arg0: i32, %arg1: i32) -> (i32, i32) {
    %c0_i32 = arith.constant 0 : i32
    %c0_i32_0 = arith.constant 0 : i32
    return %c0_i32, %arg1 : i32, i32
  }
  func.func @transform_3(%arg0: i32, %arg1: i32) -> (i32, i32) {
    %c0_i32 = arith.constant 0 : i32
    return %arg0, %arg1 : i32, i32
  }
}

</mosaic_0001>

<bundles_post_ra>
// kernel: tpu_custom_call.1
= control target key start
LH: loop header
LB: loop body
LE: loop exit
PB: predicated region body
PF: predicated region fallthrough
CT: control target
= control target key end

     0   :  { %v128_v0 = vmov 0.0   ;;  %vm129_vm0 = vmmov 0   ;;  %vm28_vm1 = vcmask 261120   ;;  %vm102_vm2 = vcmask 7168   ;;  %s171_s1 = inlined_call_operand.vmem [shape: f32[32,1], index: 1, kind: input, shape index: {}]   ;;  %s172_s2 = inlined_call_operand.<no memory space> [shape: f32[1,1], index: 2, kind: input, shape index: {}]   ;;  %s173_s0 = inlined_call_operand.vmem [shape: f32[8,32], index: 0, kind: input, shape index: {}]   ;;  %s174_s3 = inlined_call_operand.vmem [shape: f32[8,1], index: 3, kind: output, shape index: {}]  }
   0x1   :  { %115 = vmatprep.subr.mxu0 %v128_v0  ;;  %v20_v1 = vld [vmem:[%s171_s1 + $0x18] sm:$0xff]  ;;  %v19_v2 = vld [vmem:[%s171_s1 + $0x10] sm:$0xff]  ;;  %123 = vmatprep.mubr.msk.f32.mxu0 %vm129_vm0, %v128_v0  ;;  %v8_v3 = vstv %s172_s2  ;;  %v18_v4 = vld [vmem:[%s171_s1 + $0x8] sm:$0xff] }
   0x2   :  { %116 = vmatpush3.msra.mxu0 %v20_v1  ;;  %9 = vst [vmem:[#allocation2] sm:$0x1] %v8_v3  ;;  %v17_v5 = vld [vmem:[%s171_s1] sm:$0xff] }
   0x3   :  { %117 = vmatprep.subr.mxu0 %v128_v0  ;;  %v16_v6 = vld [vmem:[%s173_s0] sm:$0xff] }
   0x4   :  { %118 = vmatpush3.msra.mxu0 %v19_v2 }
   0x5   :  { %119 = vmatprep.subr.mxu0 %v128_v0 }
   0x6   :  { %120 = vmatpush3.msra.mxu0 %v18_v4 }
   0x7   :  { %121 = vmatprep.subr.mxu0 %v128_v0 }
   0x8   :  { %122 = vmatpush3.msra.mxu0 %v17_v5 }
   0x9   :  { %124 = vmatmul.mubr.msk.f32.vlgmr.msra.gmra.mxu0 %vm28_vm1, %v16_v6  ;;  %v108_v7 = vld [vmem:[#allocation2] ss:$0 sm:$0xff] }
  0xc9   :  { %v98_v8 = vpop.f32.mrf.mxu0 }
  0xca   :  { %v99_v9 = vadd.f32 %v108_v7, %v98_v8 }
  0xcb   :  { %v125_v10 = vpop.f32.mrf.mxu0 }
  0xcc   :  { %103 = vst.msk [vmem:[%s174_s3] sm:$0xff] %vm102_vm2, %v99_v9 }

</bundles_post_ra>
